<compile_context>
chip_gen: v5e
topology: v5e:2x2
jax: 0.10.0
libtpu: 0.0.40
codegen_flags: <defaults>
</compile_context>

<pallas_src>
import functools

import jax
import jax.numpy as jnp
from jax.experimental import pallas as pl
from jax.experimental.pallas import tpu as pltpu


_VMEM_BUDGET_BYTES = 10 * 1024 * 1024    # padded per-block working set cap
_MIN_BLOCK_IN_BYTES = 1 * 1024 * 1024    # hide the ~0.35us per-grid-step overhead
_TARGET_GRID_STEPS = 8                   # megacore sharding + DMA/compute overlap


def _round_up(x, m):
    return ((x + m - 1) // m) * m


def _sublane_pack(dtype):
    # sublane packing: f32 -> 8, bf16 -> 16, int8/fp8 -> 32
    return {4: 8, 2: 16, 1: 32}.get(jnp.dtype(dtype).itemsize, 8)


def _mtvdn_sum_kernel(qs_ref, out_ref, *, n_agents, d):
    """qs_ref: (tbt, n_agents*d) contiguous row block; out_ref: (tbt, d).

    out[r, :] = sum_k qs[r, k*d:(k+1)*d] — unrolled static lane-slice adds,
    accumulated in f32 (one live (tbt, d) f32 slab, no full-block f32 temp).
    """
    acc = qs_ref[:, 0:d].astype(jnp.float32)
    for k in range(1, n_agents):
        acc = acc + qs_ref[:, k * d:(k + 1) * d].astype(jnp.float32)
    out_ref[...] = acc.astype(out_ref.dtype)


def _choose_block_rows(bt, n, d, dtype):
    """Rows per block along the flattened batch*time axis, sized by padded bytes."""
    isz = jnp.dtype(dtype).itemsize
    pack = _sublane_pack(dtype)
    pad_in = _round_up(n * d, 128)        # lane-padded input row width
    pad_out = _round_up(d, 128)           # lane-padded output row width
    # Padded VMEM bytes per block row: 2x double-buffered input, 2x
    # double-buffered output, ~4 f32 slabs of in-kernel temporaries.
    per_row = 2 * pad_in * isz + 2 * pad_out * isz + 4 * pad_out * 4
    max_rows = max(pack, (_VMEM_BUDGET_BYTES // per_row) // pack * pack)
    min_rows = _round_up(max(pack, _MIN_BLOCK_IN_BYTES // (pad_in * isz)), pack)
    min_rows = min(min_rows, max_rows)

    rows = pl.cdiv(bt, _TARGET_GRID_STEPS)        # aim for ~8 grid steps
    rows = max(min(rows, max_rows), min_rows)     # but keep blocks >= ~1 MiB
    rows = min(_round_up(rows, pack), max_rows)   # sublane-pack aligned
    if rows >= bt:
        return bt                                 # single full-extent block
    return rows


def mtvdn_mixer_forward(agent_qs, states=None, task=None, phi_mode=False,
                        w_inv=None, *, force_pallas=False):
    """MTVDNMixer.forward with with_bias=False (module default).

    agent_qs: (B, T, N, D) -> returns (B, T, 1, D) = sum over the agent axis.
    states / task / phi_mode / w_inv only matter for the with_bias=True branch,
    which the module hard-disables; bias == 0 so `bias * w_inv` is dropped
    (identical for finite w_inv).
    """
    del states, task, phi_mode, w_inv
    B, T, N, D = agent_qs.shape
    BT = B * T
    isz = jnp.dtype(agent_qs.dtype).itemsize

    # Small-problem fast path: below ~1 MiB the launch + single-grid-step
    # overhead dominates and XLA's fused reduce is already at the HBM roofline.
    if not force_pallas and BT * N * D * isz < _MIN_BLOCK_IN_BYTES:
        return jnp.sum(agent_qs, axis=2, keepdims=True)

    # Free, contiguous view (no HBM transpose): fold the agent axis into the
    # lane axis so every block DMA is fully contiguous and lane-dense whenever
    # N*D >= 128 (module default 4*32 = 128).
    qs2 = agent_qs.reshape(BT, N * D)
    tbt = _choose_block_rows(BT, N, D, agent_qs.dtype)
    grid = (pl.cdiv(BT, tbt),)

    out_flat = pl.pallas_call(
        functools.partial(_mtvdn_sum_kernel, n_agents=N, d=D),
        out_shape=jax.ShapeDtypeStruct((BT, D), agent_qs.dtype),
        grid_spec=pltpu.PrefetchScalarGridSpec(
            num_scalar_prefetch=0,
            grid=grid,
            in_specs=[pl.BlockSpec((tbt, N * D), lambda i: (i, 0))],
            out_specs=pl.BlockSpec((tbt, D), lambda i: (i, 0)),
        ),
        compiler_params=pltpu.CompilerParams(
            dimension_semantics=("parallel",),
            vmem_limit_bytes=32 * 1024 * 1024,
        ),
    )(qs2)

    return out_flat.reshape(B, T, 1, D)


if __name__ == "__main__":
    key = jax.random.PRNGKey(0)
    k1, k2, k3, k4 = jax.random.split(key, 4)

    # Module-typical small shapes: batch=2, seq=8, n_agents=4, phi_dim=32.
    B, T, N, D = 2, 8, 4, 32
    state_dim = 16
    agent_qs = jax.random.normal(k1, (B, T, N, D), dtype=jnp.float32)
    states = jax.random.normal(k2, (B, T, state_dim), dtype=jnp.float32)  # unused: with_bias=False
    w_inv = jax.random.normal(k3, (B, T, 1, D), dtype=jnp.float32)        # unused: bias == 0

    ref = jnp.sum(agent_qs, axis=2, keepdims=True)

    # 1) Default wrapper call (tiny input -> XLA fast path).
    out_fast = jax.block_until_ready(mtvdn_mixer_forward(agent_qs, states, w_inv=w_inv))
    assert out_fast.shape == (B, T, 1, D)
    assert jnp.allclose(out_fast, ref, atol=1e-5, rtol=1e-5)

    # 2) Force the Pallas kernel on the same tiny shapes (single full-extent block).
    out_small = jax.block_until_ready(
        mtvdn_mixer_forward(agent_qs, states, w_inv=w_inv, force_pallas=True))
    assert out_small.shape == (B, T, 1, D)
    assert jnp.allclose(out_small, ref, atol=1e-5, rtol=1e-5)

    # 3) Multi-block grid with a partial last block (BT=4200 -> 2048-row blocks).
    B2, T2 = 2, 2100
    aq2 = jax.random.normal(k4, (B2, T2, N, D), dtype=jnp.float32)
    out2 = jax.block_until_ready(mtvdn_mixer_forward(aq2, force_pallas=True))
    ref2 = jnp.sum(aq2, axis=2, keepdims=True)
    assert out2.shape == (B2, T2, 1, D)
    assert jnp.allclose(out2, ref2, atol=1e-5, rtol=1e-5)

    # 4) bf16 inputs (sublane pack 16, odd sizes), f32 in-kernel accumulation.
    aq3 = jax.random.normal(k2, (2, 9, 5, 32), dtype=jnp.float32).astype(jnp.bfloat16)
    out3 = jax.block_until_ready(mtvdn_mixer_forward(aq3, force_pallas=True))
    ref3 = jnp.sum(aq3.astype(jnp.float32), axis=2, keepdims=True).astype(jnp.bfloat16)
    assert out3.shape == (2, 9, 1, 32)
    assert jnp.allclose(out3.astype(jnp.float32), ref3.astype(jnp.float32),
                        atol=1e-2, rtol=1e-2)

    print("KERNEL_OK")
</pallas_src>

<mosaic_0001>
module attributes {stable_mosaic.version = 11 : i64} {
  func.func @_mtvdn_sum_kernel(%arg0: i32, %arg1: memref<16x128xf32, #tpu.memory_space<vmem>>, %arg2: memref<16x32xf32, #tpu.memory_space<vmem>>) attributes {dimension_semantics = [#tpu.dimension_semantics<parallel>], iteration_bounds = array<i64: 1>, scalar_prefetch = 0 : i64, scratch_operands = 0 : i64, tpu.core_type = #tpu.core_type<tc>, window_params = [{transform_indices = @transform_0, window_bounds = array<i64: 16, 128>}, {transform_indices = @transform_1, window_bounds = array<i64: 16, 32>}]} {
    %c0 = arith.constant 0 : index
    %c0_0 = arith.constant 0 : index
    %0 = vector.load %arg1[%c0, %c0_0] : memref<16x128xf32, #tpu.memory_space<vmem>>, vector<16x32xf32>
    %c0_1 = arith.constant 0 : index
    %c32 = arith.constant 32 : index
    %1 = vector.load %arg1[%c0_1, %c32] : memref<16x128xf32, #tpu.memory_space<vmem>>, vector<16x32xf32>
    %2 = arith.addf %0, %1 : vector<16x32xf32>
    %c0_2 = arith.constant 0 : index
    %c64 = arith.constant 64 : index
    %3 = vector.load %arg1[%c0_2, %c64] : memref<16x128xf32, #tpu.memory_space<vmem>>, vector<16x32xf32>
    %4 = arith.addf %2, %3 : vector<16x32xf32>
    %c0_3 = arith.constant 0 : index
    %c96 = arith.constant 96 : index
    %5 = vector.load %arg1[%c0_3, %c96] : memref<16x128xf32, #tpu.memory_space<vmem>>, vector<16x32xf32>
    %6 = arith.addf %4, %5 : vector<16x32xf32>
    %c0_4 = arith.constant 0 : index
    %c0_5 = arith.constant 0 : index
    %7 = vector.load %arg2[%c0_4, %c0_5] : memref<16x32xf32, #tpu.memory_space<vmem>>, vector<16x32xf32>
    tpu.vector_store %arg2[%c0_4, %c0_5], %6 {strides = array<i32>} : memref<16x32xf32, #tpu.memory_space<vmem>>, vector<16x32xf32>,
    return
  }
  func.func @transform_0(%arg0: i32) -> (i32, i32) {
    %c0_i32 = arith.constant 0 : i32
    %c0_i32_0 = arith.constant 0 : i32
    return %arg0, %c0_i32 : i32, i32
  }
  func.func @transform_1(%arg0: i32) -> (i32, i32) {
    %c0_i32 = arith.constant 0 : i32
    %c0_i32_0 = arith.constant 0 : i32
    return %arg0, %c0_i32 : i32, i32
  }
}

</mosaic_0001>

<bundles_post_ra>
// kernel: tpu_custom_call.1
= control target key start
LH: loop header
LB: loop body
LE: loop exit
PB: predicated region body
PF: predicated region fallthrough
CT: control target
= control target key end

     0   :  { %6 = vsyncpa [#allocation3], 0  ;;  %s163_s0 = inlined_call_operand.hbm [shape: f32[16,128], index: 0, kind: input, shape index: {}]   ;;  %s164_s1 = inlined_call_operand.hbm [shape: f32[16,32], index: 1, kind: output, shape index: {}]  }
   0x1   :  { %7 = vsyncpa [#allocation4], 0  ;;  %s12_s8 = sshll.u32 %s163_s0, 4  ;;  %s134_s9 = smov [#allocation2]   ;;  %s13_s8 = int_to_ptr.hbm [resolvable:$true] %s12_s8 }
   0x2   :  { %s14_s10 = sshll.u32 %s134_s9, 4  ;;  %s135_s11 = smov 128   ;;  %s15_s10 = int_to_ptr.vmem [resolvable:$true] %s14_s10 }
   0x3   :  { %s136_s12 = smov 8  }
   0x4   :  { %20 = dma.hbm_to_vmem [thread:$0]  %s13_s8, 256, %s15_s10, [#allocation3], %s135_s11, %s135_s11, %s136_s12  }
   0x5   :  { %130 = dma.done.wait [#allocation3], 256  }
   0x6   :  { %131 = vsyncadd [#allocation3], 4294967040  ;;  %v25_v0 = vld [vmem:[#allocation2] sm:$0xff]  ;;  %s137_s13 = smov 96   ;;  %s138_s14 = smov 64   ;;  %v26_v1 = vld [vmem:[#allocation2 + $0x8] sm:$0xff] }
   0x7   :  { %29 = vrot.lane.b32.xlu0 %v25_v0, %s137_s13  ;;  %37 = vrot.lane.b32.xlu1 %v25_v0, %s138_s14  ;;  %s139_s15 = smov 32   ;;  %vm53_vm0 = vcmask 261120   ;;  %s140_s0 = smov [#allocation5]  }
   0x8   :  { %45 = vrot.lane.b32.xlu2 %v25_v0, %s139_s15  ;;  %s60_s16 = sshll.u32 %s140_s0, 4  ;;  %s62_s19 = sshll.u32 %s164_s1, 4  ;;  %s61_s16 = int_to_ptr.vmem [resolvable:$true] %s60_s16  ;;  %s63_s19 = int_to_ptr.hbm [resolvable:$true] %s62_s19 }
   0xf   :  { %31 = vrot.lane.b32.xlu0 %v26_v1, %s137_s13  ;;  %39 = vrot.lane.b32.xlu1 %v26_v1, %s138_s14 }
  0x10   :  { %47 = vrot.lane.b32.xlu2 %v26_v1, %s139_s15 }
  0x62   :  { %v46_v2 = vpop.permute.xlu2 %45 }
  0x6a   :  { %v48_v11 = vpop.permute.xlu2 %47 }
  0x79   :  { %v30_v3 = vpop.permute.xlu0 %29  ;;  %v38_v4 = vpop.permute.xlu1 %37 }
  0x7a   :  { %v35_v5 = vadd.f32 %v30_v3, %v25_v0 }
  0x7c   :  { %v43_v6 = vadd.f32 %v38_v4, %v35_v5 }
  0x7e   :  { %v51_v7 = vadd.f32 %v46_v2, %v43_v6 }
  0x80   :  { %54 = vst.msk [vmem:[#allocation5] sm:$0xff] %vm53_vm0, %v51_v7 }
  0x81   :  { %v32_v8 = vpop.permute.xlu0 %31  ;;  %v40_v9 = vpop.permute.xlu1 %39 }
  0x82   :  { %v36_v10 = vadd.f32 %v32_v8, %v26_v1 }
  0x84   :  { %v44_v12 = vadd.f32 %v40_v9, %v36_v10 }
  0x86   :  { %v52_v13 = vadd.f32 %v48_v11, %v44_v12 }
  0x88   :  { %55 = vst.msk [vmem:[#allocation5 + $0x8] sm:$0xff] %vm53_vm0, %v52_v13 }
  0x89   :  { %68 = dma.vmem_to_hbm [thread:$0]  %s61_s16, 256, %s63_s19, [#allocation4], %s135_s11, %s135_s11, %s136_s12  }
  0x8a   :  { %132 = dma.done.wait [#allocation4], 256  }
  0x8b   :  { %133 = vsyncadd [#allocation4], 4294967040 }
  0x8c   :  { %73 = vsyncpa [#allocation3], 1 }
  0x8d   :  { %74 = vsyncpa [#allocation4], 1 }

</bundles_post_ra>
